<compile_context>
chip_gen: v5e
topology: v5e:2x2
jax: 0.10.0
libtpu: 0.0.40
codegen_flags: <defaults>
</compile_context>

<pallas_src>
import functools

import jax
import jax.numpy as jnp
from jax.experimental import pallas as pl
from jax.experimental.pallas import tpu as pltpu


def _mlp_kernel(w1_ref, b1_ref, w2_ref, b2_ref, xt_ref, ot_ref):
    # w1_ref: (H, IN)    b1_ref: (H, 1)
    # w2_ref: (OUT, H)   b2_ref: (OUT, 1)
    # xt_ref: (IN, TB)   ot_ref: (OUT, TB)      TB = batch tile on the lane axis
    w1 = w1_ref[...]
    b1 = b1_ref[...]
    w2 = w2_ref[...]
    b2 = b2_ref[...]
    xt = xt_ref[...]

    h_dim, in_dim = w1.shape  # (16, 4), static Python ints

    # Layer 1: h = relu(W1 @ x.T + b1) -> (H, TB); K=4, unrolled broadcast-FMAs.
    h = b1 + w1[:, 0:1] * xt[0:1, :]
    for k in range(1, in_dim):
        h = h + w1[:, k : k + 1] * xt[k : k + 1, :]
    h = jnp.maximum(h, 0.0)

    # Layer 2: y.T = W2 @ h + b2 -> (OUT, TB); K=16, unrolled broadcast-FMAs.
    o = b2 + w2[:, 0:1] * h[0:1, :]
    for j in range(1, h_dim):
        o = o + w2[:, j : j + 1] * h[j : j + 1, :]

    ot_ref[...] = o.astype(ot_ref.dtype)


def _round_up(n, m):
    return pl.cdiv(n, m) * m


@functools.partial(jax.jit, static_argnames=("tb",))
def simple_model_forward(x, w1, b1, w2, b2, *, tb=1024):
    """Pallas forward pass.

    x: (B, IN) f32, w1: (IN, H), b1: (H,), w2: (H, OUT), b2: (OUT,).
    Returns (B, OUT) f32 == relu(x @ w1 + b1) @ w2 + b2  (torch Linear semantics).
    """
    B, IN = x.shape
    H = w1.shape[1]
    OUT = w2.shape[1]

    # Lane-dense layout: put batch on the last (128-lane) axis and pad it to a
    # multiple of the batch tile. Padded columns are computed and sliced off.
    tb = min(tb, _round_up(B, 128))  # tb is a multiple of 128
    Bp = _round_up(B, tb)
    xt = jnp.pad(x.T, ((0, 0), (0, Bp - B)))  # (IN, Bp)

    w1_t = w1.T                # (H, IN)   torch-style layout
    w2_t = w2.T                # (OUT, H)
    b1_c = b1.reshape(H, 1)
    b2_c = b2.reshape(OUT, 1)

    grid = (Bp // tb,)
    yt = pl.pallas_call(
        _mlp_kernel,
        out_shape=jax.ShapeDtypeStruct((OUT, Bp), jnp.float32),
        grid=grid,
        in_specs=[
            pl.BlockSpec((H, IN), lambda i: (0, 0)),    # weights VMEM-resident
            pl.BlockSpec((H, 1), lambda i: (0, 0)),
            pl.BlockSpec((OUT, H), lambda i: (0, 0)),
            pl.BlockSpec((OUT, 1), lambda i: (0, 0)),
            pl.BlockSpec((IN, tb), lambda i: (0, i)),   # streamed batch tile
        ],
        out_specs=pl.BlockSpec((OUT, tb), lambda i: (0, i)),
        compiler_params=pltpu.CompilerParams(
            dimension_semantics=("parallel",),          # shard batch tiles across TCs (v7x)
        ),
    )(w1_t, b1_c, w2_t, b2_c, xt)

    return yt[:, :B].T  # (B, OUT)


def init_params(key, input_size=4, hidden_size=16, output_size=2):
    """Deterministic init mimicking torch.nn.Linear (uniform +-1/sqrt(fan_in))."""
    k1, k2, k3, k4 = jax.random.split(key, 4)
    lim1 = 1.0 / (input_size ** 0.5)
    lim2 = 1.0 / (hidden_size ** 0.5)
    # stored as (in, out): equals torch weight (out, in) transposed
    w1 = jax.random.uniform(k1, (input_size, hidden_size), jnp.float32, -lim1, lim1)
    b1 = jax.random.uniform(k2, (hidden_size,), jnp.float32, -lim1, lim1)
    w2 = jax.random.uniform(k3, (hidden_size, output_size), jnp.float32, -lim2, lim2)
    b2 = jax.random.uniform(k4, (output_size,), jnp.float32, -lim2, lim2)
    return w1, b1, w2, b2


if __name__ == "__main__":
    key = jax.random.PRNGKey(0)
    kx, kp = jax.random.split(key)

    batch, input_size, hidden_size, output_size = 8, 4, 16, 2
    x = jax.random.normal(kx, (batch, input_size), jnp.float32)
    w1, b1, w2, b2 = init_params(kp, input_size, hidden_size, output_size)

    out = simple_model_forward(x, w1, b1, w2, b2)
    out = jax.block_until_ready(out)

    # reference check in plain JAX
    ref = jnp.maximum(x @ w1 + b1, 0.0) @ w2 + b2
    assert out.shape == (batch, output_size)
    assert jnp.allclose(out, ref, atol=1e-5, rtol=1e-5)

    print("KERNEL_OK")
</pallas_src>

<mosaic_0001>
module attributes {stable_mosaic.version = 11 : i64} {
  func.func @_mlp_kernel(%arg0: i32, %arg1: memref<16x4xf32, #tpu.memory_space<vmem>>, %arg2: memref<16x1xf32, #tpu.memory_space<vmem>>, %arg3: memref<2x16xf32, #tpu.memory_space<vmem>>, %arg4: memref<2x1xf32, #tpu.memory_space<vmem>>, %arg5: memref<4x128xf32, #tpu.memory_space<vmem>>, %arg6: memref<2x128xf32, #tpu.memory_space<vmem>>) attributes {dimension_semantics = [#tpu.dimension_semantics<parallel>], iteration_bounds = array<i64: 1>, scalar_prefetch = 0 : i64, scratch_operands = 0 : i64, tpu.core_type = #tpu.core_type<tc>, window_params = [{pipeline_mode = #tpu.pipeline_mode<synchronous>, transform_indices = @transform_0, window_bounds = array<i64: 16, 4>}, {pipeline_mode = #tpu.pipeline_mode<synchronous>, transform_indices = @transform_1, window_bounds = array<i64: 16, 1>}, {pipeline_mode = #tpu.pipeline_mode<synchronous>, transform_indices = @transform_2, window_bounds = array<i64: 2, 16>}, {pipeline_mode = #tpu.pipeline_mode<synchronous>, transform_indices = @transform_3, window_bounds = array<i64: 2, 1>}, {transform_indices = @transform_4, window_bounds = array<i64: 4, 128>}, {transform_indices = @transform_5, window_bounds = array<i64: 2, 128>}]} {
    %c0 = arith.constant 0 : index
    %c0_0 = arith.constant 0 : index
    %0 = vector.load %arg1[%c0, %c0_0] : memref<16x4xf32, #tpu.memory_space<vmem>>, vector<16x4xf32>
    %c0_1 = arith.constant 0 : index
    %c0_2 = arith.constant 0 : index
    %1 = vector.load %arg2[%c0_1, %c0_2] : memref<16x1xf32, #tpu.memory_space<vmem>>, vector<16x1xf32>
    %c0_3 = arith.constant 0 : index
    %c0_4 = arith.constant 0 : index
    %2 = vector.load %arg3[%c0_3, %c0_4] : memref<2x16xf32, #tpu.memory_space<vmem>>, vector<2x16xf32>
    %c0_5 = arith.constant 0 : index
    %c0_6 = arith.constant 0 : index
    %3 = vector.load %arg4[%c0_5, %c0_6] : memref<2x1xf32, #tpu.memory_space<vmem>>, vector<2x1xf32>
    %c0_7 = arith.constant 0 : index
    %c0_8 = arith.constant 0 : index
    %4 = vector.load %arg5[%c0_7, %c0_8] : memref<4x128xf32, #tpu.memory_space<vmem>>, vector<4x128xf32>
    %5 = vector.extract_strided_slice %0 {offsets = [0, 0], sizes = [16, 1], strides = [1, 1]} : vector<16x4xf32> to vector<16x1xf32>
    %6 = vector.extract_strided_slice %4 {offsets = [0, 0], sizes = [1, 128], strides = [1, 1]} : vector<4x128xf32> to vector<1x128xf32>
    %7 = vector.broadcast %5 : vector<16x1xf32> to vector<16x128xf32>
    %8 = vector.broadcast %6 : vector<1x128xf32> to vector<16x128xf32>
    %9 = arith.mulf %7, %8 : vector<16x128xf32>
    %10 = vector.broadcast %1 : vector<16x1xf32> to vector<16x128xf32>
    %11 = arith.addf %10, %9 : vector<16x128xf32>
    %12 = vector.extract_strided_slice %0 {offsets = [0, 1], sizes = [16, 1], strides = [1, 1]} : vector<16x4xf32> to vector<16x1xf32>
    %13 = vector.extract_strided_slice %4 {offsets = [1, 0], sizes = [1, 128], strides = [1, 1]} : vector<4x128xf32> to vector<1x128xf32>
    %14 = vector.broadcast %12 : vector<16x1xf32> to vector<16x128xf32>
    %15 = vector.broadcast %13 : vector<1x128xf32> to vector<16x128xf32>
    %16 = arith.mulf %14, %15 : vector<16x128xf32>
    %17 = arith.addf %11, %16 : vector<16x128xf32>
    %18 = vector.extract_strided_slice %0 {offsets = [0, 2], sizes = [16, 1], strides = [1, 1]} : vector<16x4xf32> to vector<16x1xf32>
    %19 = vector.extract_strided_slice %4 {offsets = [2, 0], sizes = [1, 128], strides = [1, 1]} : vector<4x128xf32> to vector<1x128xf32>
    %20 = vector.broadcast %18 : vector<16x1xf32> to vector<16x128xf32>
    %21 = vector.broadcast %19 : vector<1x128xf32> to vector<16x128xf32>
    %22 = arith.mulf %20, %21 : vector<16x128xf32>
    %23 = arith.addf %17, %22 : vector<16x128xf32>
    %24 = vector.extract_strided_slice %0 {offsets = [0, 3], sizes = [16, 1], strides = [1, 1]} : vector<16x4xf32> to vector<16x1xf32>
    %25 = vector.extract_strided_slice %4 {offsets = [3, 0], sizes = [1, 128], strides = [1, 1]} : vector<4x128xf32> to vector<1x128xf32>
    %26 = vector.broadcast %24 : vector<16x1xf32> to vector<16x128xf32>
    %27 = vector.broadcast %25 : vector<1x128xf32> to vector<16x128xf32>
    %28 = arith.mulf %26, %27 : vector<16x128xf32>
    %29 = arith.addf %23, %28 : vector<16x128xf32>
    %cst = arith.constant 0.000000e+00 : f32
    %30 = vector.broadcast %cst : f32 to vector<16x128xf32>
    %31 = arith.maximumf %29, %30 : vector<16x128xf32>
    %32 = vector.extract_strided_slice %2 {offsets = [0, 0], sizes = [2, 1], strides = [1, 1]} : vector<2x16xf32> to vector<2x1xf32>
    %33 = vector.extract_strided_slice %31 {offsets = [0, 0], sizes = [1, 128], strides = [1, 1]} : vector<16x128xf32> to vector<1x128xf32>
    %34 = vector.broadcast %32 : vector<2x1xf32> to vector<2x128xf32>
    %35 = vector.broadcast %33 : vector<1x128xf32> to vector<2x128xf32>
    %36 = arith.mulf %34, %35 : vector<2x128xf32>
    %37 = vector.broadcast %3 : vector<2x1xf32> to vector<2x128xf32>
    %38 = arith.addf %37, %36 : vector<2x128xf32>
    %39 = vector.extract_strided_slice %2 {offsets = [0, 1], sizes = [2, 1], strides = [1, 1]} : vector<2x16xf32> to vector<2x1xf32>
    %40 = vector.extract_strided_slice %31 {offsets = [1, 0], sizes = [1, 128], strides = [1, 1]} : vector<16x128xf32> to vector<1x128xf32>
    %41 = vector.broadcast %39 : vector<2x1xf32> to vector<2x128xf32>
    %42 = vector.broadcast %40 : vector<1x128xf32> to vector<2x128xf32>
    %43 = arith.mulf %41, %42 : vector<2x128xf32>
    %44 = arith.addf %38, %43 : vector<2x128xf32>
    %45 = vector.extract_strided_slice %2 {offsets = [0, 2], sizes = [2, 1], strides = [1, 1]} : vector<2x16xf32> to vector<2x1xf32>
    %46 = vector.extract_strided_slice %31 {offsets = [2, 0], sizes = [1, 128], strides = [1, 1]} : vector<16x128xf32> to vector<1x128xf32>
    %47 = vector.broadcast %45 : vector<2x1xf32> to vector<2x128xf32>
    %48 = vector.broadcast %46 : vector<1x128xf32> to vector<2x128xf32>
    %49 = arith.mulf %47, %48 : vector<2x128xf32>
    %50 = arith.addf %44, %49 : vector<2x128xf32>
    %51 = vector.extract_strided_slice %2 {offsets = [0, 3], sizes = [2, 1], strides = [1, 1]} : vector<2x16xf32> to vector<2x1xf32>
    %52 = vector.extract_strided_slice %31 {offsets = [3, 0], sizes = [1, 128], strides = [1, 1]} : vector<16x128xf32> to vector<1x128xf32>
    %53 = vector.broadcast %51 : vector<2x1xf32> to vector<2x128xf32>
    %54 = vector.broadcast %52 : vector<1x128xf32> to vector<2x128xf32>
    %55 = arith.mulf %53, %54 : vector<2x128xf32>
    %56 = arith.addf %50, %55 : vector<2x128xf32>
    %57 = vector.extract_strided_slice %2 {offsets = [0, 4], sizes = [2, 1], strides = [1, 1]} : vector<2x16xf32> to vector<2x1xf32>
    %58 = vector.extract_strided_slice %31 {offsets = [4, 0], sizes = [1, 128], strides = [1, 1]} : vector<16x128xf32> to vector<1x128xf32>
    %59 = vector.broadcast %57 : vector<2x1xf32> to vector<2x128xf32>
    %60 = vector.broadcast %58 : vector<1x128xf32> to vector<2x128xf32>
    %61 = arith.mulf %59, %60 : vector<2x128xf32>
    %62 = arith.addf %56, %61 : vector<2x128xf32>
    %63 = vector.extract_strided_slice %2 {offsets = [0, 5], sizes = [2, 1], strides = [1, 1]} : vector<2x16xf32> to vector<2x1xf32>
    %64 = vector.extract_strided_slice %31 {offsets = [5, 0], sizes = [1, 128], strides = [1, 1]} : vector<16x128xf32> to vector<1x128xf32>
    %65 = vector.broadcast %63 : vector<2x1xf32> to vector<2x128xf32>
    %66 = vector.broadcast %64 : vector<1x128xf32> to vector<2x128xf32>
    %67 = arith.mulf %65, %66 : vector<2x128xf32>
    %68 = arith.addf %62, %67 : vector<2x128xf32>
    %69 = vector.extract_strided_slice %2 {offsets = [0, 6], sizes = [2, 1], strides = [1, 1]} : vector<2x16xf32> to vector<2x1xf32>
    %70 = vector.extract_strided_slice %31 {offsets = [6, 0], sizes = [1, 128], strides = [1, 1]} : vector<16x128xf32> to vector<1x128xf32>
    %71 = vector.broadcast %69 : vector<2x1xf32> to vector<2x128xf32>
    %72 = vector.broadcast %70 : vector<1x128xf32> to vector<2x128xf32>
    %73 = arith.mulf %71, %72 : vector<2x128xf32>
    %74 = arith.addf %68, %73 : vector<2x128xf32>
    %75 = vector.extract_strided_slice %2 {offsets = [0, 7], sizes = [2, 1], strides = [1, 1]} : vector<2x16xf32> to vector<2x1xf32>
    %76 = vector.extract_strided_slice %31 {offsets = [7, 0], sizes = [1, 128], strides = [1, 1]} : vector<16x128xf32> to vector<1x128xf32>
    %77 = vector.broadcast %75 : vector<2x1xf32> to vector<2x128xf32>
    %78 = vector.broadcast %76 : vector<1x128xf32> to vector<2x128xf32>
    %79 = arith.mulf %77, %78 : vector<2x128xf32>
    %80 = arith.addf %74, %79 : vector<2x128xf32>
    %81 = vector.extract_strided_slice %2 {offsets = [0, 8], sizes = [2, 1], strides = [1, 1]} : vector<2x16xf32> to vector<2x1xf32>
    %82 = vector.extract_strided_slice %31 {offsets = [8, 0], sizes = [1, 128], strides = [1, 1]} : vector<16x128xf32> to vector<1x128xf32>
    %83 = vector.broadcast %81 : vector<2x1xf32> to vector<2x128xf32>
    %84 = vector.broadcast %82 : vector<1x128xf32> to vector<2x128xf32>
    %85 = arith.mulf %83, %84 : vector<2x128xf32>
    %86 = arith.addf %80, %85 : vector<2x128xf32>
    %87 = vector.extract_strided_slice %2 {offsets = [0, 9], sizes = [2, 1], strides = [1, 1]} : vector<2x16xf32> to vector<2x1xf32>
    %88 = vector.extract_strided_slice %31 {offsets = [9, 0], sizes = [1, 128], strides = [1, 1]} : vector<16x128xf32> to vector<1x128xf32>
    %89 = vector.broadcast %87 : vector<2x1xf32> to vector<2x128xf32>
    %90 = vector.broadcast %88 : vector<1x128xf32> to vector<2x128xf32>
    %91 = arith.mulf %89, %90 : vector<2x128xf32>
    %92 = arith.addf %86, %91 : vector<2x128xf32>
    %93 = vector.extract_strided_slice %2 {offsets = [0, 10], sizes = [2, 1], strides = [1, 1]} : vector<2x16xf32> to vector<2x1xf32>
    %94 = vector.extract_strided_slice %31 {offsets = [10, 0], sizes = [1, 128], strides = [1, 1]} : vector<16x128xf32> to vector<1x128xf32>
    %95 = vector.broadcast %93 : vector<2x1xf32> to vector<2x128xf32>
    %96 = vector.broadcast %94 : vector<1x128xf32> to vector<2x128xf32>
    %97 = arith.mulf %95, %96 : vector<2x128xf32>
    %98 = arith.addf %92, %97 : vector<2x128xf32>
    %99 = vector.extract_strided_slice %2 {offsets = [0, 11], sizes = [2, 1], strides = [1, 1]} : vector<2x16xf32> to vector<2x1xf32>
    %100 = vector.extract_strided_slice %31 {offsets = [11, 0], sizes = [1, 128], strides = [1, 1]} : vector<16x128xf32> to vector<1x128xf32>
    %101 = vector.broadcast %99 : vector<2x1xf32> to vector<2x128xf32>
    %102 = vector.broadcast %100 : vector<1x128xf32> to vector<2x128xf32>
    %103 = arith.mulf %101, %102 : vector<2x128xf32>
    %104 = arith.addf %98, %103 : vector<2x128xf32>
    %105 = vector.extract_strided_slice %2 {offsets = [0, 12], sizes = [2, 1], strides = [1, 1]} : vector<2x16xf32> to vector<2x1xf32>
    %106 = vector.extract_strided_slice %31 {offsets = [12, 0], sizes = [1, 128], strides = [1, 1]} : vector<16x128xf32> to vector<1x128xf32>
    %107 = vector.broadcast %105 : vector<2x1xf32> to vector<2x128xf32>
    %108 = vector.broadcast %106 : vector<1x128xf32> to vector<2x128xf32>
    %109 = arith.mulf %107, %108 : vector<2x128xf32>
    %110 = arith.addf %104, %109 : vector<2x128xf32>
    %111 = vector.extract_strided_slice %2 {offsets = [0, 13], sizes = [2, 1], strides = [1, 1]} : vector<2x16xf32> to vector<2x1xf32>
    %112 = vector.extract_strided_slice %31 {offsets = [13, 0], sizes = [1, 128], strides = [1, 1]} : vector<16x128xf32> to vector<1x128xf32>
    %113 = vector.broadcast %111 : vector<2x1xf32> to vector<2x128xf32>
    %114 = vector.broadcast %112 : vector<1x128xf32> to vector<2x128xf32>
    %115 = arith.mulf %113, %114 : vector<2x128xf32>
    %116 = arith.addf %110, %115 : vector<2x128xf32>
    %117 = vector.extract_strided_slice %2 {offsets = [0, 14], sizes = [2, 1], strides = [1, 1]} : vector<2x16xf32> to vector<2x1xf32>
    %118 = vector.extract_strided_slice %31 {offsets = [14, 0], sizes = [1, 128], strides = [1, 1]} : vector<16x128xf32> to vector<1x128xf32>
    %119 = vector.broadcast %117 : vector<2x1xf32> to vector<2x128xf32>
    %120 = vector.broadcast %118 : vector<1x128xf32> to vector<2x128xf32>
    %121 = arith.mulf %119, %120 : vector<2x128xf32>
    %122 = arith.addf %116, %121 : vector<2x128xf32>
    %123 = vector.extract_strided_slice %2 {offsets = [0, 15], sizes = [2, 1], strides = [1, 1]} : vector<2x16xf32> to vector<2x1xf32>
    %124 = vector.extract_strided_slice %31 {offsets = [15, 0], sizes = [1, 128], strides = [1, 1]} : vector<16x128xf32> to vector<1x128xf32>
    %125 = vector.broadcast %123 : vector<2x1xf32> to vector<2x128xf32>
    %126 = vector.broadcast %124 : vector<1x128xf32> to vector<2x128xf32>
    %127 = arith.mulf %125, %126 : vector<2x128xf32>
    %128 = arith.addf %122, %127 : vector<2x128xf32>
    %c0_9 = arith.constant 0 : index
    %c0_10 = arith.constant 0 : index
    %129 = vector.load %arg6[%c0_9, %c0_10] : memref<2x128xf32, #tpu.memory_space<vmem>>, vector<2x128xf32>
    tpu.vector_store %arg6[%c0_9, %c0_10], %128 {strides = array<i32>} : memref<2x128xf32, #tpu.memory_space<vmem>>, vector<2x128xf32>,
    return
  }
  func.func @transform_0(%arg0: i32) -> (i32, i32) {
    %c0_i32 = arith.constant 0 : i32
    %c0_i32_0 = arith.constant 0 : i32
    %c0_i32_1 = arith.constant 0 : i32
    return %c0_i32, %c0_i32_0 : i32, i32
  }
  func.func @transform_1(%arg0: i32) -> (i32, i32) {
    %c0_i32 = arith.constant 0 : i32
    %c0_i32_0 = arith.constant 0 : i32
    %c0_i32_1 = arith.constant 0 : i32
    return %c0_i32, %c0_i32_0 : i32, i32
  }
  func.func @transform_2(%arg0: i32) -> (i32, i32) {
    %c0_i32 = arith.constant 0 : i32
    %c0_i32_0 = arith.constant 0 : i32
    %c0_i32_1 = arith.constant 0 : i32
    return %c0_i32, %c0_i32_0 : i32, i32
  }
  func.func @transform_3(%arg0: i32) -> (i32, i32) {
    %c0_i32 = arith.constant 0 : i32
    %c0_i32_0 = arith.constant 0 : i32
    %c0_i32_1 = arith.constant 0 : i32
    return %c0_i32, %c0_i32_0 : i32, i32
  }
  func.func @transform_4(%arg0: i32) -> (i32, i32) {
    %c0_i32 = arith.constant 0 : i32
    %c0_i32_0 = arith.constant 0 : i32
    return %c0_i32, %arg0 : i32, i32
  }
  func.func @transform_5(%arg0: i32) -> (i32, i32) {
    %c0_i32 = arith.constant 0 : i32
    %c0_i32_0 = arith.constant 0 : i32
    return %c0_i32, %arg0 : i32, i32
  }
}

</mosaic_0001>

<bundles_post_ra>
// kernel: simple_model_forward.1
= control target key start
LH: loop header
LB: loop body
LE: loop exit
PB: predicated region body
PF: predicated region fallthrough
CT: control target
= control target key end

     0   :  { %v255_v0 = vmov 2   ;;  %v256_v1 = vmov 1   ;;  %v257_v4 = vmov 0   ;;  %v258_v7 = vmov 3   ;;  %s325_s1 = inlined_call_operand.vmem [shape: f32[16,1], index: 1, kind: input, shape index: {}]   ;;  %s326_s0 = inlined_call_operand.vmem [shape: f32[16,4], index: 0, kind: input, shape index: {}]   ;;  %s327_s3 = inlined_call_operand.vmem [shape: f32[2,1], index: 3, kind: input, shape index: {}]   ;;  %s328_s2 = inlined_call_operand.vmem [shape: f32[2,16], index: 2, kind: input, shape index: {}]   ;;  %s329_s4 = inlined_call_operand.vmem [shape: f32[4,128], index: 4, kind: input, shape index: {}]   ;;  %s330_s5 = inlined_call_operand.vmem [shape: f32[2,128], index: 5, kind: output, shape index: {}]  }
   0x1   :  { %234 = vset.pattern.permute.xlu0 %v255_v0  ;;  %233 = vset.pattern.permute.xlu2 %v256_v1  ;;  %v22_v2 = vld [vmem:[%s325_s1] sm:$0xff]  ;;  %v23_v5 = vld [vmem:[%s325_s1 + $0x8] sm:$0xff]  ;;  %v259_v10 = vmov 5   ;;  %v260_v11 = vmov 10   ;;  %v261_v12 = vmov 4   ;;  %v262_v13 = vmov 15  }
   0x2   :  { %v20_v3 = vld [vmem:[%s326_s0] sm:$0xff]  ;;  %232 = vset.pattern.permute.xlu1 %v257_v4  ;;  %v21_v6 = vld [vmem:[%s326_s0 + $0x8] sm:$0xff]  ;;  %v263_v14 = vmov 6   ;;  %v264_v15 = vmov 7   ;;  %v265_v16 = vmov 8   ;;  %v266_v17 = vmov 9  }
   0x3   :  { %66 = vperm.xlu0 %234, %v20_v3   ;;  %42 = vperm.xlu1 %232, %v22_v2   ;;  %v25_v8 = vld [vmem:[%s327_s3] sm:$0x3]  ;;  %v267_v18 = vmov 11   ;;  %v268_v19 = vmov 12   ;;  %v269_v20 = vmov 13   ;;  %v270_v21 = vmov 14  }
   0x4   :  { %53 = vperm.xlu2 %233, %v20_v3   ;;  %v24_v9 = vld [vmem:[%s328_s2] sm:$0x3] }
   0x5   :  { %v26_v26 = vld [vmem:[%s329_s4] sm:$0xf] }
   0x6   :  { %v37_v27 = vperm.slane %v26_v26, 0  ;;  %v60_v32 = vperm.slane %v26_v26, 1  ;;  %v73_v33 = vperm.slane %v26_v26, 2  ;;  %v86_v37 = vperm.slane %v26_v26, 3 }
   0xb   :  { %235 = vset.pattern.permute.xlu0 %v257_v4  ;;  %47 = vperm.xlu1 %232, %v23_v5  }
   0xc   :  { %57 = vperm.xlu2 %233, %v21_v6   ;;  %29 = vperm.xlu0 %235, %v20_v3  }
  0x13   :  { %236 = vset.pattern.permute.xlu1 %v255_v0 }
  0x14   :  { %237 = vset.pattern.permute.xlu2 %v258_v7  ;;  %70 = vperm.xlu1 %236, %v21_v6  }
  0x15   :  { %34 = vperm.xlu0 %235, %v21_v6   ;;  %79 = vperm.xlu2 %237, %v20_v3  }
  0x1c   :  { %238 = vset.pattern.permute.xlu1 %v258_v7 }
  0x1d   :  { %102 = vperm.xlu0 %235, %v25_v8   ;;  %239 = vset.pattern.permute.xlu2 %v257_v4 }
  0x1e   :  { %83 = vperm.xlu1 %238, %v21_v6   ;;  %95 = vperm.xlu2 %239, %v24_v9  }
  0x25   :  { %244 = vset.pattern.permute.xlu0 %v259_v10 }
  0x26   :  { %240 = vset.pattern.permute.xlu1 %v256_v1  ;;  %135 = vperm.xlu0 %244, %v24_v9  }
  0x27   :  { %241 = vset.pattern.permute.xlu2 %v255_v0  ;;  %107 = vperm.xlu1 %240, %v24_v9  }
  0x28   :  { %114 = vperm.xlu2 %241, %v24_v9  }
  0x2e   :  { %249 = vset.pattern.permute.xlu0 %v260_v11 }
  0x2f   :  { %242 = vset.pattern.permute.xlu1 %v258_v7  ;;  %170 = vperm.xlu0 %249, %v24_v9  }
  0x30   :  { %243 = vset.pattern.permute.xlu2 %v261_v12  ;;  %121 = vperm.xlu1 %242, %v24_v9  }
  0x31   :  { %128 = vperm.xlu2 %243, %v24_v9  }
  0x37   :  { %254 = vset.pattern.permute.xlu0 %v262_v13 }
  0x38   :  { %245 = vset.pattern.permute.xlu1 %v263_v14  ;;  %205 = vperm.xlu0 %254, %v24_v9  }
  0x39   :  { %246 = vset.pattern.permute.xlu2 %v264_v15  ;;  %142 = vperm.xlu1 %245, %v24_v9  }
  0x3a   :  { %149 = vperm.xlu2 %246, %v24_v9  }
  0x41   :  { %247 = vset.pattern.permute.xlu1 %v265_v16 }
  0x42   :  { %248 = vset.pattern.permute.xlu2 %v266_v17  ;;  %156 = vperm.xlu1 %247, %v24_v9  }
  0x43   :  { %163 = vperm.xlu2 %248, %v24_v9  }
  0x4a   :  { %250 = vset.pattern.permute.xlu1 %v267_v18 }
  0x4b   :  { %251 = vset.pattern.permute.xlu2 %v268_v19  ;;  %177 = vperm.xlu1 %250, %v24_v9  }
  0x4c   :  { %184 = vperm.xlu2 %251, %v24_v9  }
  0x53   :  { %252 = vset.pattern.permute.xlu1 %v269_v20 }
  0x54   :  { %253 = vset.pattern.permute.xlu2 %v270_v21  ;;  %191 = vperm.xlu1 %252, %v24_v9  }
  0x55   :  { %198 = vperm.xlu2 %253, %v24_v9  }
  0x5e   :  { %v54_v22 = vpop.permute.xlu2 %53 }
  0x5f   :  { %v61_v35 = vmul.f32 %v60_v32, %v54_v22 }
  0x66   :  { %v58_v24 = vpop.permute.xlu2 %57 }
  0x67   :  { %v62_v60 = vmul.f32 %v60_v32, %v58_v24 }
  0x6f   :  { %v80_v30 = vpop.permute.xlu2 %79 }
  0x70   :  { %v87_v41 = vmul.f32 %v86_v37, %v80_v30 }
  0x75   :  { %v67_v23 = vpop.permute.xlu0 %66  ;;  %v43_v25 = vpop.permute.xlu1 %42 }
  0x76   :  { %v74_v38 = vmul.f32 %v73_v33, %v67_v23 }
  0x78   :  { %v96_v40 = vpop.permute.xlu2 %95 }
  0x7d   :  { %v48_v28 = vpop.permute.xlu1 %47 }
  0x7e   :  { %v30_v29 = vpop.permute.xlu0 %29 }
  0x7f   :  { %v38_v31 = vmul.f32 %v37_v27, %v30_v29 }
  0x81   :  { %v50_v34 = vadd.f32 %v43_v25, %v38_v31 }
  0x82   :  { %v115_v45 = vpop.permute.xlu2 %114 }
  0x83   :  { %v63_v39 = vadd.f32 %v61_v35, %v50_v34 }
  0x85   :  { %v76_v42 = vadd.f32 %v74_v38, %v63_v39 }
  0x86   :  { %v71_v36 = vpop.permute.xlu1 %70 }
  0x87   :  { %v89_v44 = vadd.f32 %v87_v41, %v76_v42  ;;  %v35_v46 = vpop.permute.xlu0 %34  ;;  %v75_v2 = vmul.f32 %v73_v33, %v71_v36 }
  0x88   :  { %v39_v50 = vmul.f32 %v37_v27, %v35_v46 }
  0x89   :  { %v91_v47 = vmax.f32 %v89_v44, 0.0 }
  0x8a   :  { %v51_v57 = vadd.f32 %v48_v28, %v39_v50 }
  0x8b   :  { %v98_v48 = vperm.slane %v91_v47, 0  ;;  %v110_v52 = vperm.slane %v91_v47, 1  ;;  %v129_v53 = vpop.permute.xlu2 %128  ;;  %v117_v56 = vperm.slane %v91_v47, 2  ;;  %v124_v62 = vperm.slane %v91_v47, 3 }
  0x8c   :  { %v64_v0 = vadd.f32 %v62_v60, %v51_v57  ;;  %v131_v3 = vperm.slane %v91_v47, 4  ;;  %v138_v13 = vperm.slane %v91_v47, 5  ;;  %v145_v15 = vperm.slane %v91_v47, 6 }
  0x8d   :  { %v99_v51 = vmul.f32 %v98_v48, %v96_v40  ;;  %v118_v63 = vmul.f32 %v117_v56, %v115_v45  ;;  %v152_v21 = vperm.slane %v91_v47, 7 }
  0x8e   :  { %v77_v7 = vadd.f32 %v75_v2, %v64_v0  ;;  %v132_v9 = vmul.f32 %v131_v3, %v129_v53 }
  0x8f   :  { %v103_v54 = vpop.permute.xlu0 %102 }
  0x90   :  { %v84_v43 = vpop.permute.xlu1 %83  ;;  %v105_v58 = vadd.f32 %v103_v54, %v99_v51 }
  0x91   :  { %v88_v4 = vmul.f32 %v86_v37, %v84_v43 }
  0x93   :  { %v90_v10 = vadd.f32 %v88_v4, %v77_v7 }
  0x94   :  { %v150_v6 = vpop.permute.xlu2 %149 }
  0x95   :  { %v92_v16 = vmax.f32 %v90_v10, 0.0  ;;  %v153_v25 = vmul.f32 %v152_v21, %v150_v6 }
  0x97   :  { %v159_v23 = vperm.slane %v92_v16, 0  ;;  %v166_v28 = vperm.slane %v92_v16, 1  ;;  %v173_v33 = vperm.slane %v92_v16, 2  ;;  %v180_v36 = vperm.slane %v92_v16, 3 }
  0x98   :  { %v136_v12 = vpop.permute.xlu0 %135  ;;  %v187_v40 = vperm.slane %v92_v16, 4  ;;  %v194_v43 = vperm.slane %v92_v16, 5  ;;  %v201_v46 = vperm.slane %v92_v16, 6  ;;  %v208_v50 = vperm.slane %v92_v16, 7 }
  0x99   :  { %v108_v49 = vpop.permute.xlu1 %107  ;;  %v139_v17 = vmul.f32 %v138_v13, %v136_v12 }
  0x9a   :  { %v111_v55 = vmul.f32 %v110_v52, %v108_v49 }
  0x9c   :  { %v112_v61 = vadd.f32 %v111_v55, %v105_v58 }
  0x9d   :  { %v164_v20 = vpop.permute.xlu2 %163 }
  0x9e   :  { %v119_v5 = vadd.f32 %v118_v63, %v112_v61  ;;  %v167_v30 = vmul.f32 %v166_v28, %v164_v20 }
  0xa1   :  { %v171_v31 = vpop.permute.xlu0 %170 }
  0xa2   :  { %v122_v59 = vpop.permute.xlu1 %121  ;;  %v174_v37 = vmul.f32 %v173_v33, %v171_v31 }
  0xa3   :  { %v125_v1 = vmul.f32 %v124_v62, %v122_v59 }
  0xa5   :  { %v126_v8 = vadd.f32 %v125_v1, %v119_v5 }
  0xa6   :  { %v185_v32 = vpop.permute.xlu2 %184 }
  0xa7   :  { %v133_v14 = vadd.f32 %v132_v9, %v126_v8  ;;  %v188_v42 = vmul.f32 %v187_v40, %v185_v32 }
  0xa9   :  { %v140_v19 = vadd.f32 %v139_v17, %v133_v14 }
  0xaa   :  { %v206_v49 = vpop.permute.xlu0 %205 }
  0xab   :  { %v143_v11 = vpop.permute.xlu1 %142  ;;  %v209_v53 = vmul.f32 %v208_v50, %v206_v49 }
  0xac   :  { %v146_v18 = vmul.f32 %v145_v15, %v143_v11 }
  0xae   :  { %v147_v22 = vadd.f32 %v146_v18, %v140_v19 }
  0xaf   :  { %v199_v44 = vpop.permute.xlu2 %198 }
  0xb0   :  { %v154_v27 = vadd.f32 %v153_v25, %v147_v22  ;;  %v202_v51 = vmul.f32 %v201_v46, %v199_v44 }
  0xb4   :  { %v157_v24 = vpop.permute.xlu1 %156 }
  0xb5   :  { %v160_v26 = vmul.f32 %v159_v23, %v157_v24 }
  0xb7   :  { %v161_v29 = vadd.f32 %v160_v26, %v154_v27 }
  0xb9   :  { %v168_v34 = vadd.f32 %v167_v30, %v161_v29 }
  0xbb   :  { %v175_v39 = vadd.f32 %v174_v37, %v168_v34 }
  0xbd   :  { %v178_v35 = vpop.permute.xlu1 %177 }
  0xbe   :  { %v181_v38 = vmul.f32 %v180_v36, %v178_v35 }
  0xc0   :  { %v182_v41 = vadd.f32 %v181_v38, %v175_v39 }
  0xc2   :  { %v189_v47 = vadd.f32 %v188_v42, %v182_v41 }
  0xc6   :  { %v192_v45 = vpop.permute.xlu1 %191 }
  0xc7   :  { %v195_v48 = vmul.f32 %v194_v43, %v192_v45 }
  0xc9   :  { %v196_v52 = vadd.f32 %v195_v48, %v189_v47 }
  0xcb   :  { %v203_v54 = vadd.f32 %v202_v51, %v196_v52 }
  0xcd   :  { %v210_v55 = vadd.f32 %v209_v53, %v203_v54 }
  0xcf   :  { %211 = vst [vmem:[%s330_s5] sm:$0x3] %v210_v55 }

</bundles_post_ra>
